<compile_context>
chip_gen: v5e
topology: v5e:2x2
jax: 0.10.0
libtpu: 0.0.40
codegen_flags: <defaults>
</compile_context>

<pallas_src>
import functools

import jax
import jax.numpy as jnp
from jax.experimental import pallas as pl
from jax.experimental.pallas import tpu as pltpu


_DEFAULT_VMEM_BUDGET = 20 << 20  # target double-buffered working set, bytes


def _sublane(itemsize: int) -> int:
    # Packed sublane count: 8 for 4-byte, 16 for 2-byte, 32 for 1-byte dtypes.
    return max(8, 32 // itemsize)


def _vmem_limit(footprint_bytes: int) -> int:
    # Headroom over the block working set for pipeline + Mosaic scratch; stay
    # well under v7x's 64 MiB physical VMEM per core (v5e/v6e have 128 MiB).
    return int(min(max(footprint_bytes + (8 << 20), 32 << 20), 56 << 20))


def _pick_b_tile(B: int, itemsize: int, *, per_row_bytes: int,
                 tiles_wanted: int, budget: int) -> int:
    sub = _sublane(itemsize)
    bt = max(1, budget // per_row_bytes)
    # Keep enough grid steps for megacore sharding (v7x: 2 TensorCores).
    bt = min(bt, max(1, -(-B // max(1, tiles_wanted))))
    if bt >= B:
        return B                               # full extent is always legal
    bt = max(sub, (bt // sub) * sub)           # dtype-aware sublane alignment
    return min(bt, B)


def _copy_block_kernel(x_ref, o_ref):
    # x_ref: (b_tile, D) input tile; o_ref: (b_tile, D) output block for one
    # (B-tile, duplicate-index) grid point.  Pure lane-dense copy.
    o_ref[...] = x_ref[...]


def _duplicate_slab_kernel(x_ref, o_ref, *, m: int, D: int):
    # Fallback body (D % 128 != 0): o_ref is the full (b_tile, m*D) slab.
    x = x_ref[...]
    for j in range(m):
        o_ref[:, pl.ds(j * D, D)] = x


def duplicate_forward(x: jax.Array, m: int,
                      *, vmem_budget_bytes: int = _DEFAULT_VMEM_BUDGET) -> jax.Array:
    """Pallas equivalent of Duplicate(m, d).forward for 2-D X of shape (B, D)."""
    B, D = x.shape
    itemsize = jnp.dtype(x.dtype).itemsize

    if m == 1:
        # A single "duplicate" is a free metadata reshape.
        return x.reshape(B, 1, D)

    cost = pl.CostEstimate(flops=0, transcendentals=0,
                           bytes_accessed=(1 + m) * B * D * itemsize)

    if D % 128 == 0:
        # --- Primary path: 2-D grid (B_tiles, m), single-block copy body. ---
        per_row = 4 * D * itemsize             # 2x in-block + 2x out-block
        b_tile = _pick_b_tile(B, itemsize, per_row_bytes=per_row,
                              tiles_wanted=-(-8 // m),
                              budget=vmem_budget_bytes)
        footprint = per_row * b_tile
        out2d = pl.pallas_call(
            _copy_block_kernel,
            out_shape=jax.ShapeDtypeStruct((B, m * D), x.dtype),
            grid_spec=pltpu.PrefetchScalarGridSpec(
                num_scalar_prefetch=0,
                grid=(pl.cdiv(B, b_tile), m),
                in_specs=[pl.BlockSpec((b_tile, D), lambda i, j: (i, 0))],
                out_specs=pl.BlockSpec((b_tile, D), lambda i, j: (i, j)),
            ),
            compiler_params=pltpu.CompilerParams(
                dimension_semantics=("parallel", "parallel"),
                vmem_limit_bytes=_vmem_limit(footprint),
            ),
            cost_estimate=cost,
        )(x)
    else:
        # --- Fallback: full-extent (b_tile, m*D) output slab (always legal). ---
        per_row = 2 * (1 + m) * D * itemsize
        b_tile = _pick_b_tile(B, itemsize, per_row_bytes=per_row,
                              tiles_wanted=2, budget=vmem_budget_bytes)
        footprint = per_row * b_tile
        out2d = pl.pallas_call(
            functools.partial(_duplicate_slab_kernel, m=m, D=D),
            out_shape=jax.ShapeDtypeStruct((B, m * D), x.dtype),
            grid_spec=pltpu.PrefetchScalarGridSpec(
                num_scalar_prefetch=0,
                grid=(pl.cdiv(B, b_tile),),
                in_specs=[pl.BlockSpec((b_tile, D), lambda i: (i, 0))],
                out_specs=pl.BlockSpec((b_tile, m * D), lambda i: (i, 0)),
            ),
            compiler_params=pltpu.CompilerParams(
                dimension_semantics=("parallel",),
                vmem_limit_bytes=_vmem_limit(footprint),
            ),
            cost_estimate=cost,
        )(x)

    # Free contiguous reshape back to the module's (B, m, D) layout.
    return out2d.reshape(B, m, D)


def duplicate_merge(x: jax.Array) -> jax.Array:
    """Pallas-free glue matching Duplicate.merge: X[:, 0, :]."""
    return x[:, 0, :]


if __name__ == "__main__":
    # Small deterministic example consistent with the module:
    #   B = 8 rows, D = 256 features, m = 4 duplicates.
    B, D, m = 8, 256, 4
    key = jax.random.PRNGKey(0)
    x = jax.random.normal(key, (B, D), dtype=jnp.float32)

    out = jax.block_until_ready(duplicate_forward(x, m))

    # Reference semantics: tile(X, [m,1,1]).transpose(0,1) == broadcast on axis 1.
    ref = jnp.broadcast_to(x[:, None, :], (B, m, D))
    assert out.shape == (B, m, D), out.shape
    assert out.dtype == x.dtype
    assert bool(jnp.all(out == ref))
    assert bool(jnp.all(duplicate_merge(out) == x))

    # Second small case: bf16 (exercises dtype-aware packed-sublane handling).
    x2 = jax.random.normal(jax.random.PRNGKey(0), (16, 128),
                           dtype=jnp.float32).astype(jnp.bfloat16)
    out2 = jax.block_until_ready(duplicate_forward(x2, 3))
    ref2 = jnp.broadcast_to(x2[:, None, :], (16, 3, 128))
    assert out2.shape == (16, 3, 128) and out2.dtype == x2.dtype
    assert bool(jnp.all(out2 == ref2))

    print("KERNEL_OK")
</pallas_src>

<mosaic_0001>
module attributes {stable_mosaic.version = 11 : i64} {
  func.func @_copy_block_kernel(%arg0: i32, %arg1: i32, %arg2: memref<8x256xf32, #tpu.memory_space<vmem>>, %arg3: memref<8x256xf32, #tpu.memory_space<vmem>>) attributes {dimension_semantics = [#tpu.dimension_semantics<parallel>, #tpu.dimension_semantics<parallel>], iteration_bounds = array<i64: 1, 4>, scalar_prefetch = 0 : i64, scratch_operands = 0 : i64, tpu.core_type = #tpu.core_type<tc>, window_params = [{transform_indices = @transform_0, window_bounds = array<i64: 8, 256>}, {transform_indices = @transform_1, window_bounds = array<i64: 8, 256>}]} {
    %c0 = arith.constant 0 : index
    %c0_0 = arith.constant 0 : index
    %0 = vector.load %arg2[%c0, %c0_0] : memref<8x256xf32, #tpu.memory_space<vmem>>, vector<8x256xf32>
    %c0_1 = arith.constant 0 : index
    %c0_2 = arith.constant 0 : index
    %1 = vector.load %arg3[%c0_1, %c0_2] : memref<8x256xf32, #tpu.memory_space<vmem>>, vector<8x256xf32>
    tpu.vector_store %arg3[%c0_1, %c0_2], %0 {strides = array<i32>} : memref<8x256xf32, #tpu.memory_space<vmem>>, vector<8x256xf32>,
    return
  }
  func.func @transform_0(%arg0: i32, %arg1: i32) -> (i32, i32) {
    %c0_i32 = arith.constant 0 : i32
    %c0_i32_0 = arith.constant 0 : i32
    return %arg0, %c0_i32 : i32, i32
  }
  func.func @transform_1(%arg0: i32, %arg1: i32) -> (i32, i32) {
    %c0_i32 = arith.constant 0 : i32
    return %arg0, %arg1 : i32, i32
  }
}

</mosaic_0001>

<bundles_post_ra>
// kernel: tpu_custom_call.1
= control target key start
LH: loop header
LB: loop body
LE: loop exit
PB: predicated region body
PF: predicated region fallthrough
CT: control target
= control target key end

     0   :  { %6 = vsyncpa [#allocation3], 0  ;;  %s527_s0 = inlined_call_operand.hbm [shape: f32[8,256], index: 0, kind: input, shape index: {}]   ;;  %s528_s1 = inlined_call_operand.hbm [shape: f32[8,1024], index: 1, kind: output, shape index: {}]  }
   0x1   :  { %7 = vsyncpa [#allocation4], 0 }
   0x2   :  { %9 = vsyncpa [#allocation4 + $0x1], 0  ;;  %s432_s6 = smov 0   ;;  %s434_s7 = smov 0  }
   0x3   :  { %s436_s8 = smov 0   ;;  %s438_s9 = smov 0  }
   0x4   :  { %s440_s10 = smov 0   ;;  %s442_s11 = smov 0  }
   0x5 LB: > { %s228_s12 = sadd.s32 4294967295, %s419_s11   ;;  %s229_s13 = sadd.s32 4294967294, %s419_s11   ;;  %s419_s11 = sphi %s442_s11, %s15_s11   ;;  %s415_s10 = sphi %s440_s10, %s535_s10   ;;  %s411_s9 = sphi %s438_s9, %s534_s9   ;;  %s407_s8 = sphi %s436_s8, %s533_s8   ;;  %s403_s7 = sphi %s434_s7, %s532_s7   ;;  %s399_s6 = sphi %s432_s6, %s531_s6  }
   0x6   : > { %s24_s14 = sadd.s32 1, %s415_s10  ;;  %s62_s15 = sadd.s32 1, %s407_s8 }
   0x7   : > { %p25_p0 = scmp.ge.s32.totalorder %s24_s14, 4  ;;  %p72_p1 = scmp.ne.s32.totalorder %s407_s8, %s403_s7 }
   0x8   : > { %p73_p2 = scmp.eq.s32.totalorder %s228_s12, 3  ;;  %p78_p3 = scmp.ne.s32.totalorder %s403_s7, %s399_s6 }
   0x9   : > { %s537_s14 = smov (%p25_p0, %s24_s14), 0  ;;  %p79_p5 = scmp.eq.s32.totalorder %s229_s13, 3 }
   0xa   : > { %p472_p4 = por %p73_p2, %p72_p1  ;;  %s58_s17 = ssub.s32 %s415_s10, %s537_s14 }
   0xb   : > { %p230_p6 = scmp.ge.s32.totalorder %s419_s11, 1  ;;  %p60_p7 = scmp.eq.s32.totalorder %s58_s17, 0 }
   0xc   : > { %p479_p8 = por %p79_p5, %p78_p3  ;;  %p86_p9 = scmp.lt.s32.totalorder %s419_s11, 5 }
   0xd   : > { %s485_s19 = scalar_select %p60_p7, %s407_s8, %s62_s15  }
   0xe   : > { %p87_p10 = pnand %p230_p6, %p86_p9  ;;  %p255_p11 = scmp.eq.s32.totalorder %s228_s12, 0 }
   0xf   : > { %s101_s22 = sshll.u32 %s527_s0, 4  ;;  %s421_s23 = smov [#allocation2]   ;;  %s102_s22 = int_to_ptr.hbm [resolvable:$true] %s101_s22 }
  0x10   : > { %p247_p12 = pneg %p87_p10  ;;  %s103_s24 = sshll.u32 %s421_s23, 4  ;;  %s104_s24 = int_to_ptr.vmem [resolvable:$true] %s103_s24 }
  0x11   : > { %116 = sbr.rel (%p87_p10) target bundleno = 39 (0x27), region = 24 }
  0x12   : > { %p248_p13 = pnand %p255_p11, %p247_p12 }
  0x14   : > { %250 = dma.hbm_to_vmem [thread:$0]  (!%p248_p13), %s102_s22, 256, %s104_s24, [#allocation3]  }
  0x16   : > { %390 = dma.done.wait (%p255_p11), [#allocation3], 256  }
  0x17   : > { %392 = vsyncadd (%p255_p11), [#allocation3], 4294967040  ;;  %s129_s25 = sand.u32 1, %s403_s7   ;;  %s240_s26 = sshll.u32 %s411_s9, 4  ;;  %v133_v0 = vld [vmem:[#allocation2] sm:$0xff]  ;;  %v134_v1 = vld [vmem:[#allocation2 + $0x8] sm:$0xff] }
  0x18   : > { %s234_s27 = sshll.u32 %s129_s25, 4  ;;  %s151_s30 = scalar_lea.hbm %s528_s1, %s240_s26 }
  0x19   : > { %s131_s2 = scalar_lea.vmem [#allocation5], %s234_s27  ;;  %s155_s4 = sshll.u32 %s151_s30, 4  ;;  %s156_s4 = int_to_ptr.hbm [resolvable:$true] %s155_s4 }
  0x1a   : > { %s153_s3 = sshll.u32 %s131_s2, 4  ;;  %135 = vst [vmem:[%s131_s2] sm:$0xff] %v133_v0  ;;  %s138_s5 = scalar_lea.sflag [#allocation4], %s129_s25  ;;  %s154_s3 = int_to_ptr.vmem [resolvable:$true] %s153_s3 }
  0x1b   : > { %136 = vst [vmem:[%s131_s2 + $0x8] sm:$0xff] %v134_v1  ;;  %s351_s12 = sshra.s32 %s156_s4, 4  ;;  %s357_s17 = scalar_lea.hbm %s528_s1, 64  ;;  %s352_s12 = int_to_ptr.hbm [resolvable:$true] %s351_s12 }
  0x1c   : > { %s353_s13 = scalar_lea.hbm %s352_s12, 16  ;;  %p358_p3 = scmp.lt.s32.totalorder %s352_s12, %s528_s1 }
  0x1d   : > { %p354_p0 = scmp.ne.s32.totalorder %s352_s12, %s353_s13  ;;  %p359_p5 = scmp.lt.s32.totalorder %s357_s17, %s353_s13 }
  0x1f   : > { %p355_p1 = pnand %p354_p0, %p472_p4  ;;  %p360_p6 = por %p359_p5, %p358_p3 }
  0x21   : > { %p356_p2 = pneg %p355_p1 }
  0x23   : > { %p361_p7 = pnand %p360_p6, %p356_p2 }
  0x25   : > { %364 = shalt.err (!%p361_p7)
}
  0x26   : > { %245 = dma.vmem_to_hbm [thread:$0]  (%p472_p4), %s154_s3, 256, %s156_s4, %s138_s5  }
  0x27 PF: > { %p257_p9 = scmp.ge.s32.totalorder %s419_s11, 2  ;;  %s167_s22 = sand.u32 1, %s399_s6  }
  0x28   : > { %s168_s23 = scalar_lea.sflag [#allocation4], %s167_s22 }
  0x29   : > { %p252_p10 = pnand %p257_p9, %p479_p8 }
  0x2b   : > { %p253_p11 = pneg %p252_p10 }
  0x2d   : > { %394 = dma.done.wait (%p253_p11), %s168_s23, 256  }
  0x2e   : > { %396 = vsyncadd (%p253_p11), %s168_s23, 4294967040  ;;  %s15_s11 = sadd.s32 1, %s419_s11   ;;  %s531_s6 = smov %s403_s7 }
  0x2f   : > { %p12_p12 = scmp.ge.s32.totalorder %s15_s11, 6   ;;  %s532_s7 = smov %s407_s8 }
  0x30   : > { %s533_s8 = smov %s485_s19  ;;  %s534_s9 = smov %s415_s10 }
  0x31   : > { %s535_s10 = smov %s537_s14  ;;  %14 = sbr.rel (!%p12_p12) target bundleno = 5 (0x5), region = 62 }
  0x36   :  { %174 = vsyncpa [#allocation3], 1 }
  0x37   :  { %176 = vsyncpa [#allocation3 + $0x1], 1 }
  0x38   :  { %177 = vsyncpa [#allocation4], 1 }
  0x39   :  { %179 = vsyncpa [#allocation4 + $0x1], 1 }

</bundles_post_ra>
